<compile_context>
chip_gen: v7x
topology: tpu7x:2x2x1
jax: 0.10.0
libtpu: 0.0.40
codegen_flags: <defaults>
</compile_context>

<pallas_src>
import jax
import jax.numpy as jnp
from jax.experimental import pallas as pl
from jax.experimental.pallas import tpu as pltpu


def _round_up(x, m):
    return (x + m - 1) // m * m


# ---------------------------------------------------------------------------
# Router GEMM  (trtllm.dsv3_router_gemm_op: logits = x @ W.T, out_dtype f32)
# ---------------------------------------------------------------------------

def _router_gemm_kernel(x_ref, wt_ref, o_ref):
    o_ref[...] = jnp.dot(x_ref[...], wt_ref[...],
                         preferred_element_type=jnp.float32)


def router_gemm(x, gate_t, token_tile):
    T_pad, H = x.shape
    E_pad = gate_t.shape[1]
    nt = T_pad // token_tile
    return pl.pallas_call(
        _router_gemm_kernel,
        out_shape=jax.ShapeDtypeStruct((T_pad, E_pad), jnp.float32),
        grid=(nt,),
        in_specs=[pl.BlockSpec((token_tile, H), lambda t: (t, 0)),
                  pl.BlockSpec((H, E_pad), lambda t: (0, 0))],
        out_specs=pl.BlockSpec((token_tile, E_pad), lambda t: (t, 0)),
    )(x, gate_t)


# ---------------------------------------------------------------------------
# Fused MoE kernel: shared expert + active routed experts + final add
# ---------------------------------------------------------------------------

def _moe_fused_kernel(eid_ref, cnt_ref,          # scalar prefetch (SMEM)
                      x_ref, rw_ref,             # resident per token tile
                      wgu_ref, w2_ref,           # streamed expert-weight tiles
                      o_ref, acc_ref, wcol_ref):
    t = pl.program_id(0)
    s = pl.program_id(1)
    i = pl.program_id(2)

    @pl.when(jnp.logical_and(s == 0, i == 0))
    def _():
        acc_ref[...] = jnp.zeros_like(acc_ref)

    # Only the first cnt[t] slots carry experts actually routed inside this
    # token tile (slot 0 is always the shared expert, weight 1.0).
    @pl.when(s < cnt_ref[t])
    def _():
        # Per-token routing weight for this slot, selected once per slot from
        # the resident lane-dense [tt, S_lanes] slab into a [tt, 1] scratch.
        @pl.when(i == 0)
        def _():
            lane = jax.lax.broadcasted_iota(jnp.int32, rw_ref.shape, 1)
            wcol_ref[...] = jnp.sum(
                jnp.where(lane == s, rw_ref[...], 0.0), axis=-1, keepdims=True)

        x = x_ref[...]
        # One fused gate|up matmul per I-tile, split in-register.
        gu = jnp.dot(x, wgu_ref[...], preferred_element_type=jnp.float32)
        ti = gu.shape[-1] // 2
        g = gu[:, :ti]
        u = gu[:, ti:]
        h = (g * jax.nn.sigmoid(g)) * u                        # SiLU(g) * u, f32
        part = jnp.dot(h.astype(x.dtype), w2_ref[...],
                       preferred_element_type=jnp.float32)     # down-proj partial
        # Routing weight applied in f32 AFTER the down projection (reference
        # semantics); accumulation over both I-tiles and expert slots.
        acc_ref[...] += wcol_ref[...] * part

    @pl.when(jnp.logical_and(s == pl.num_programs(1) - 1,
                             i == pl.num_programs(2) - 1))
    def _():
        o_ref[...] = acc_ref[...].astype(o_ref.dtype)


def moe_fused_forward(x, rw, slot_ids, cnt, wgu, w2f, *, token_tile,
                      vmem_limit_bytes=56 * 1024 * 1024):
    T_pad, H = x.shape
    S_lanes = rw.shape[1]
    nt, S_pad = slot_ids.shape
    _, nI, ti, _ = w2f.shape
    tt = token_tile
    slot_flat = slot_ids.reshape(-1)

    def w_map(t, s, i, eid, cnt_ref):
        # slot_ids repeats the last valid expert id for padded slots, so `e`
        # never forces a new block there; redirect the I-tile index of padded
        # slots to the last tile already fetched -> no extra DMA for them.
        e = eid[t * S_pad + s]
        valid = (s < cnt_ref[t]).astype(jnp.int32)
        ii = i * valid + (nI - 1) * (1 - valid)
        return (e, ii, 0, 0)

    grid_spec = pltpu.PrefetchScalarGridSpec(
        num_scalar_prefetch=2,
        grid=(nt, S_pad, nI),
        in_specs=[
            pl.BlockSpec((tt, H), lambda t, s, i, eid, cnt: (t, 0)),        # x tile
            pl.BlockSpec((tt, S_lanes), lambda t, s, i, eid, cnt: (t, 0)),  # routing wts
            pl.BlockSpec((None, None, H, 2 * ti), w_map),                   # gate|up tile
            pl.BlockSpec((None, None, ti, H), w_map),                       # down tile
        ],
        out_specs=pl.BlockSpec((tt, H), lambda t, s, i, eid, cnt: (t, 0)),
        scratch_shapes=[pltpu.VMEM((tt, H), jnp.float32),   # f32 accumulator
                        pltpu.VMEM((tt, 1), jnp.float32)],  # per-slot routing col
    )
    return pl.pallas_call(
        _moe_fused_kernel,
        out_shape=jax.ShapeDtypeStruct((T_pad, H), x.dtype),
        grid_spec=grid_spec,
        compiler_params=pltpu.CompilerParams(
            dimension_semantics=("parallel", "arbitrary", "arbitrary"),
            vmem_limit_bytes=vmem_limit_bytes),
    )(slot_flat, cnt, x, rw, wgu, w2f)


# ---------------------------------------------------------------------------
# Routing (Deepseekv3RoutingImpl.noaux_tc, non-fused reference path) — plain JAX
# ---------------------------------------------------------------------------

def noaux_tc_routing(logits, e_score_correction_bias, *, n_group, topk_group,
                     top_k, routed_scaling_factor):
    scores = jax.nn.sigmoid(logits.astype(jnp.float32))
    swb = scores + e_score_correction_bias[None, :].astype(jnp.float32)
    T, E = scores.shape
    epg = E // n_group

    grouped = swb.reshape(T, n_group, epg)
    top2, _ = jax.lax.top_k(grouped, 2)
    group_scores = top2.sum(axis=-1)                               # [T, n_group]
    _, group_idx = jax.lax.top_k(group_scores, topk_group)         # [T, topk_group]

    rows = jnp.arange(T)[:, None]
    group_mask = jnp.zeros_like(group_scores).at[rows, group_idx].set(1.0)
    score_mask = jnp.repeat(group_mask, epg, axis=-1)              # [T, E]
    swb_masked = swb * score_mask

    _, topk_idx = jax.lax.top_k(swb_masked, top_k)
    new_mask = jnp.zeros_like(scores).at[rows, topk_idx].set(1.0)
    scores_m = scores * new_mask
    score_sum = scores_m.sum(axis=-1, keepdims=True) + 1e-20
    scores_n = scores_m / score_sum * routed_scaling_factor

    topk_values, topk_indices = jax.lax.top_k(scores_n, top_k)
    return topk_indices.astype(jnp.int32), topk_values.astype(jnp.float32)


# ---------------------------------------------------------------------------
# Module
# ---------------------------------------------------------------------------

class Deepseekv3MoEPallas:
    def __init__(self, key, *, num_experts, top_k, hidden_size, intermediate_size,
                 shared_expert_intermediate_size, n_group, topk_group,
                 routed_scaling_factor, dtype=jnp.bfloat16, token_tile=256):
        H, I, Is, E = (hidden_size, intermediate_size,
                       shared_expert_intermediate_size, num_experts)
        self.top_k = top_k
        self.n_group = n_group
        self.topk_group = topk_group
        self.routed_scaling_factor = routed_scaling_factor
        self.num_experts = E
        self.token_tile = token_tile
        self.dtype = dtype

        # Intermediate-dim tile: keeps double-buffered streamed weight tiles
        # (H*2ti + ti*H bf16, x2 buffers) plus x/out/acc under ~48 MiB.
        I_all = max(I, Is)
        ti = 256 if I_all > 128 else 128
        I_pad = _round_up(I_all, ti)
        self.ti = ti
        self.nI = I_pad // ti

        ks = jax.random.split(key, 8)
        s = 0.05

        def rnd(k, shape):
            return (jax.random.normal(k, shape, dtype=jnp.float32) * s).astype(dtype)

        # DeepseekV3Gate weights (nn.Linear [out,in]) -> [in,out], lane-padded.
        gate_w = rnd(ks[0], (E, H))
        E_pad = _round_up(E, 128)
        self.gate_t = jnp.zeros((H, E_pad), dtype).at[:, :E].set(gate_w.T)
        self.e_score_correction_bias = (
            jax.random.normal(ks[1], (E,), dtype=jnp.float32) * s)

        # Routed experts (GatedMLP, nn.Linear [out,in]) and the shared expert.
        w1 = rnd(ks[2], (E, I, H))     # gate proj
        w3 = rnd(ks[3], (E, I, H))     # up proj
        w2 = rnd(ks[4], (E, H, I))     # down proj
        sw1 = rnd(ks[5], (Is, H))
        sw3 = rnd(ks[6], (Is, H))
        sw2 = rnd(ks[7], (H, Is))

        # Plain pre-transposed copies (only used by the in-script reference).
        self.ref_w1t = jnp.swapaxes(w1, 1, 2)    # [E, H, I]
        self.ref_w3t = jnp.swapaxes(w3, 1, 2)    # [E, H, I]
        self.ref_w2t = jnp.swapaxes(w2, 1, 2)    # [E, I, H]
        self.ref_sw1t = sw1.T                    # [H, Is]
        self.ref_sw3t = sw3.T                    # [H, Is]
        self.ref_sw2t = sw2.T                    # [Is, H]

        # Fused streamed layout: shared expert appended as expert id E, gate|up
        # concatenated per I-tile, intermediate dim zero-padded to I_pad.
        nI = self.nI
        g_all = jnp.zeros((E + 1, H, I_pad), dtype).at[:E, :, :I].set(self.ref_w1t)
        g_all = g_all.at[E, :, :Is].set(self.ref_sw1t)
        u_all = jnp.zeros((E + 1, H, I_pad), dtype).at[:E, :, :I].set(self.ref_w3t)
        u_all = u_all.at[E, :, :Is].set(self.ref_sw3t)
        d_all = jnp.zeros((E + 1, I_pad, H), dtype).at[:E, :I, :].set(self.ref_w2t)
        d_all = d_all.at[E, :Is, :].set(self.ref_sw2t)

        g_t = g_all.reshape(E + 1, H, nI, ti).transpose(0, 2, 1, 3)   # [E+1,nI,H,ti]
        u_t = u_all.reshape(E + 1, H, nI, ti).transpose(0, 2, 1, 3)
        self.wgu = jnp.concatenate([g_t, u_t], axis=-1)               # [E+1,nI,H,2ti]
        self.w2f = d_all.reshape(E + 1, nI, ti, H)                    # [E+1,nI,ti,H]

        # tp_size == 1, use_dp == False -> no shared-output scale, no allreduce.
        self.shared_output_scale = None

    def __call__(self, hidden_states):
        T, H = hidden_states.shape
        E = self.num_experts
        top_k = self.top_k

        tt = self.token_tile if T >= self.token_tile else _round_up(T, 8)
        T_pad = _round_up(T, tt)
        nt = T_pad // tt

        x = hidden_states
        if T_pad != T:
            x = jnp.zeros((T_pad, H), hidden_states.dtype).at[:T].set(hidden_states)

        # 1. router GEMM (token-tiled) -> f32 logits.
        logits = router_gemm(x, self.gate_t, tt)[:T, :E]

        # 2. noaux_tc routing (small, sort-heavy -> plain JAX).
        topk_idx, topk_vals = noaux_tc_routing(
            logits, self.e_score_correction_bias,
            n_group=self.n_group, topk_group=self.topk_group,
            top_k=top_k, routed_scaling_factor=self.routed_scaling_factor)

        # 3. per-token-tile active-expert slot lists.  Slot 0 of every tile is
        #    the shared expert (id E, weight 1.0); slots 1..cnt-1 are routed
        #    experts present in this tile; padded slots repeat the last valid id.
        S_r = min(E, tt * top_k)
        S_pad = S_r + 1
        S_lanes = _round_up(S_pad, 128)

        idx_pad = jnp.full((T_pad, top_k), E, dtype=jnp.int32).at[:T].set(topk_idx)
        present = (idx_pad.reshape(nt, tt * top_k)[:, :, None]
                   == jnp.arange(E)[None, None, :]).any(axis=1)           # [nt, E]
        k_t = present.sum(axis=-1).astype(jnp.int32)                      # [nt]
        ids_sorted = jnp.sort(
            jnp.where(present, jnp.arange(E)[None, :], E), axis=-1)[:, :S_r]
        last_valid = jnp.take_along_axis(
            ids_sorted, jnp.clip(k_t - 1, 0, S_r - 1)[:, None], axis=1)   # [nt, 1]
        last_valid = jnp.where(k_t[:, None] > 0, last_valid, E)
        ids_fixed = jnp.where(jnp.arange(S_r)[None, :] < k_t[:, None],
                              ids_sorted, last_valid)
        slot_ids = jnp.concatenate(
            [jnp.full((nt, 1), E, jnp.int32), ids_fixed.astype(jnp.int32)],
            axis=1)                                                       # [nt, S_pad]
        cnt = (k_t + 1).astype(jnp.int32)                                 # [nt]

        # 4. per-tile routing-weight slab [T_pad, S_lanes]: column s carries the
        #    token's weight for slot_ids[tile, s]; column 0 = 1.0 (shared).
        tw_dense = jnp.zeros((T_pad, E), jnp.float32).at[
            jnp.arange(T)[:, None], topk_idx].set(topk_vals)
        tw_tiles = tw_dense.reshape(nt, tt, E)
        gather_idx = jnp.clip(ids_fixed, 0, E - 1)
        rw_routed = jnp.take_along_axis(
            tw_tiles, jnp.broadcast_to(gather_idx[:, None, :], (nt, tt, S_r)),
            axis=2)
        rw = jnp.concatenate([jnp.ones((nt, tt, 1), jnp.float32), rw_routed],
                             axis=2)
        rw = jnp.pad(rw, ((0, 0), (0, 0), (0, S_lanes - S_pad)))
        rw = rw.reshape(T_pad, S_lanes)

        # 5. fused kernel: shared expert + routed experts + final add.
        out = moe_fused_forward(x, rw, slot_ids, cnt, self.wgu, self.w2f,
                                token_tile=tt)
        return out[:T]


# ---------------------------------------------------------------------------
# Pure-JAX reference (mirrors the PyTorch module semantics) for verification
# ---------------------------------------------------------------------------

def reference_forward(moe, hidden_states):
    x = hidden_states
    T, _ = x.shape
    E = moe.num_experts
    logits = jnp.dot(x, moe.gate_t[:, :E], preferred_element_type=jnp.float32)
    topk_idx, topk_vals = noaux_tc_routing(
        logits, moe.e_score_correction_bias, n_group=moe.n_group,
        topk_group=moe.topk_group, top_k=moe.top_k,
        routed_scaling_factor=moe.routed_scaling_factor)
    tw = jnp.zeros((T, E), jnp.float32).at[
        jnp.arange(T)[:, None], topk_idx].set(topk_vals)

    def gated_mlp(xin, w1t, w3t, w2t):
        g = jnp.dot(xin, w1t, preferred_element_type=jnp.float32)
        u = jnp.dot(xin, w3t, preferred_element_type=jnp.float32)
        h = (g * jax.nn.sigmoid(g)) * u
        return jnp.dot(h.astype(xin.dtype), w2t, preferred_element_type=jnp.float32)

    shared = gated_mlp(x, moe.ref_sw1t, moe.ref_sw3t, moe.ref_sw2t)
    routed = jnp.zeros_like(shared)
    for e in range(E):
        routed = routed + tw[:, e:e + 1] * gated_mlp(
            x, moe.ref_w1t[e], moe.ref_w3t[e], moe.ref_w2t[e])
    return (shared + routed).astype(x.dtype)


if __name__ == "__main__":
    key = jax.random.PRNGKey(0)
    T, H = 300, 256
    E, I, SHARED_I = 32, 128, 512
    moe = Deepseekv3MoEPallas(
        key,
        num_experts=E, top_k=2, hidden_size=H, intermediate_size=I,
        shared_expert_intermediate_size=SHARED_I,
        n_group=8, topk_group=4, routed_scaling_factor=2.5,
        dtype=jnp.bfloat16,
    )
    x = jax.random.normal(jax.random.PRNGKey(1), (T, H), dtype=jnp.float32
                          ).astype(jnp.bfloat16)

    out = moe(x)
    jax.block_until_ready(out)
    assert out.shape == (T, H) and out.dtype == jnp.bfloat16

    ref = reference_forward(moe, x)
    assert bool(jnp.allclose(out.astype(jnp.float32), ref.astype(jnp.float32),
                             atol=5e-2, rtol=5e-2)), "mismatch vs reference"
    print("KERNEL_OK")
</pallas_src>

<mosaic_0001>
module attributes {stable_mosaic.version = 11 : i64} {
  func.func @_router_gemm_kernel(%arg0: i32, %arg1: memref<256x256xbf16, #tpu.memory_space<vmem>>, %arg2: memref<256x128xbf16, #tpu.memory_space<vmem>>, %arg3: memref<256x128xf32, #tpu.memory_space<vmem>>) attributes {dimension_semantics = [#tpu.dimension_semantics<arbitrary>], iteration_bounds = array<i64: 2>, scalar_prefetch = 0 : i64, scratch_operands = 0 : i64, tpu.core_type = #tpu.core_type<tc>, window_params = [{transform_indices = @transform_0, window_bounds = array<i64: 256, 256>}, {pipeline_mode = #tpu.pipeline_mode<synchronous>, transform_indices = @transform_1, window_bounds = array<i64: 256, 128>}, {transform_indices = @transform_2, window_bounds = array<i64: 256, 128>}]} {
    %c0 = arith.constant 0 : index
    %c0_0 = arith.constant 0 : index
    %0 = vector.load %arg1[%c0, %c0_0] : memref<256x256xbf16, #tpu.memory_space<vmem>>, vector<256x256xbf16>
    %c0_1 = arith.constant 0 : index
    %c0_2 = arith.constant 0 : index
    %1 = vector.load %arg2[%c0_1, %c0_2] : memref<256x128xbf16, #tpu.memory_space<vmem>>, vector<256x128xbf16>
    %cst = arith.constant dense<0.000000e+00> : vector<256x128xf32>
    %2 = tpu.matmul %0, %1, %cst {dimension_numbers = #tpu.dot_dimension_numbers<[1], [0], [0], [1], [0, 0, 1, 1], [], []>} : vector<256x256xbf16>, vector<256x128xbf16>, vector<256x128xf32> -> vector<256x128xf32>
    %c0_3 = arith.constant 0 : index
    %c0_4 = arith.constant 0 : index
    %3 = vector.load %arg3[%c0_3, %c0_4] : memref<256x128xf32, #tpu.memory_space<vmem>>, vector<256x128xf32>
    tpu.vector_store %arg3[%c0_3, %c0_4], %2 {strides = array<i32>} : memref<256x128xf32, #tpu.memory_space<vmem>>, vector<256x128xf32>,
    return
  }
  func.func @transform_0(%arg0: i32) -> (i32, i32) {
    %c0_i32 = arith.constant 0 : i32
    %c0_i32_0 = arith.constant 0 : i32
    return %arg0, %c0_i32 : i32, i32
  }
  func.func @transform_1(%arg0: i32) -> (i32, i32) {
    %c0_i32 = arith.constant 0 : i32
    %c0_i32_0 = arith.constant 0 : i32
    %c0_i32_1 = arith.constant 0 : i32
    return %c0_i32, %c0_i32_0 : i32, i32
  }
  func.func @transform_2(%arg0: i32) -> (i32, i32) {
    %c0_i32 = arith.constant 0 : i32
    %c0_i32_0 = arith.constant 0 : i32
    return %arg0, %c0_i32 : i32, i32
  }
}

</mosaic_0001>

<bundles_post_ra>
// kernel: tpu_custom_call.1
= control target key start
LH: loop header
LB: loop body
LE: loop exit
PB: predicated region body
PF: predicated region fallthrough
CT: control target
= control target key end

     0   :  { %7 = vsyncpa [#allocation3], 0  ;;  %s1542_s0 = inlined_call_operand.hbm [shape: bf16[512,256], index: 0, kind: input, shape index: {}]   ;;  %s1543_s1 = inlined_call_operand.hbm [shape: bf16[256,128], index: 1, kind: input, shape index: {}]   ;;  %s1544_s2 = inlined_call_operand.hbm [shape: f32[512,128], index: 2, kind: output, shape index: {}]  }
   0x1   :  { %9 = vsyncpa [#allocation3 + $0x1], 0 }
   0x2   :  { %10 = vsyncpa [#allocation6], 0 }
   0x3   :  { %11 = vsyncpa [#allocation4], 0 }
   0x4   :  { %13 = vsyncpa [#allocation4 + $0x1], 0  ;;  %s1268_s9 = smov 0   ;;  %s1270_s10 = smov 0  }
   0x5   :  { %s1272_s11 = smov 0   ;;  %s1274_s12 = smov 0  }
   0x6 LB: > { %s1289_s13 = sadd.s32 4294967295, %s1242_s12   ;;  %s791_s14 = sadd.s32 4294967294, %s1242_s12   ;;  %s1242_s12 = sphi %s1274_s12, %s1564_s12   ;;  %s1238_s11 = sphi %s1272_s11, %s1563_s11   ;;  %s1234_s10 = sphi %s1270_s10, %s1562_s10   ;;  %s1230_s9 = sphi %s1268_s9, %s1561_s9  }
   0x7   : > { %p39_p0 = scmp.ne.s32.totalorder %s1234_s10, %s1230_s9  ;;  %p1545_p1 = scmp.eq.s32.totalorder %s1289_s13, 0 }
   0x8   : > { %p90_p3 = scmp.eq.s32.totalorder %s791_s14, 1  ;;  %p792_p5 = scmp.ge.s32.totalorder %s1242_s12, 1 }
   0x9   : > { %p1298_p4 = por %p1545_p1, %p39_p0  ;;  %p97_p7 = scmp.lt.s32.totalorder %s1242_s12, 3 }
   0xa   : > { %p1303_p6 = por %p90_p3, %p39_p0  ;;  %s1244_s18 = smov [#allocation5]  }
   0xb   : > { %s1548_s15 = scalar_select %p1298_p4, 1, 0 }
   0xc   : > { %s1549_s16 = scalar_select %p1303_p6, 1, 0 }
   0xd   : > { %p1308_p8 = pnand %p792_p5, %p97_p7  ;;  %s109_s19 = sshll.u32 %s1244_s18, 4  ;;  %s1312_s19 = int_to_ptr.vmem [resolvable:$true] %s109_s19 }
   0xe   : > { %s1324_s21 = sadd.s32 1, %s1242_s12   ;;  %s26_s22 = sadd.s32 1, %s1238_s11 }
   0xf   : > { %s1550_s17 = scalar_select %p1308_p8, 1, 0 }
  0x10   : > { %p995_p9 = pneg %p1308_p8  ;;  %s23_s23 = ssub.s32 %s1242_s12, %s1324_s21 }
  0x11   : > { %s1114_s26 = scalar_lea.hbm %s1543_s1, 2048 }
  0x12   : > { %p1319_p11 = pnand %p995_p9, %p1545_p1  ;;  %p1115_p12 = scmp.ne.s32.totalorder %s1543_s1, %s1114_s26 }
  0x13   : > { %p1121_p5 = scmp.lt.u32.totalorder %s1114_s26, %s1543_s1 }
  0x14   : > { %p1116_p13 = pneg %p1319_p11 }
  0x16   : > { %p1117_p0 = pnand %p1116_p13, %p1115_p12 }
  0x18   : > { %p1118_p3 = pneg %p1117_p0 }
  0x1a   : > { %p1123_p7 = pnand %p1121_p5, %p1118_p3 }
  0x1c   : > { %1126 = shalt.err (!%p1123_p7)
}
  0x1d   : > { %s1127_s3 = scalar_lea.vmem %s1312_s19, 2048  ;;  %p1135_p2 = scmp.lt.s32.totalorder %s1312_s19, %s1312_s19 }
  0x1e   : > { %p1128_p9 = scmp.ne.s32.totalorder %s1312_s19, %s1127_s3  ;;  %p1136_p6 = scmp.lt.s32.totalorder %s1127_s3, %s1127_s3 }
  0x20   : > { %p1130_p10 = pnand %p1128_p9, %p1116_p13  ;;  %p1137_p4 = por %p1136_p6, %p1135_p2 }
  0x22   : > { %p1131_p1 = pneg %p1130_p10 }
  0x24   : > { %p1138_p8 = pnand %p1137_p4, %p1131_p1 }
  0x26   : > { %1141 = shalt.err (!%p1138_p8)
}
  0x27   : > { %s1245_s4 = smov 64   ;;  %s1246_s5 = smov 4  }
  0x28   : > { %998 = dma.hbm_to_vmem [thread:$0]  (!%p1319_p11), %s1543_s1, 2048, %s1312_s19, [#allocation6], %s1245_s4, %s1245_s4, %s1246_s5  }
  0x29   : > { %p24_p2 = scmp.eq.s32.totalorder %s23_s23, 0  ;;  %p33_p1 = scmp.ne.s32.totalorder %s1238_s11, %s1234_s10 }
  0x2a   : > { %p34_p4 = scmp.eq.s32.totalorder %s1242_s12, 0  ;;  %p1008_p6 = scmp.lt.s32.totalorder %s1242_s12, 2 }
  0x2b   : > { %s1355_s8 = scalar_select %p24_p2, %s1238_s11, %s26_s22  }
  0x2c   : > { %p35_p8 = por %p34_p4, %p33_p1  ;;  %p1552_p10 = scmp.eq.s32.totalorder %s1289_s13, 1 }
  0x2d   : > { %s123_s18 = sand.u32 1, %s1238_s11   ;;  %s857_s24 = sshll.u32 %s1242_s12, 12 }
  0x2e   : > { %p1359_p12 = por %p1552_p10, %p33_p1  ;;  %s795_s25 = sshll.u32 %s123_s18, 8 }
  0x2f   : > { %s1368_s27 = scalar_lea.hbm %s1542_s0, %s857_s24  ;;  %s127_s19 = scalar_lea.vmem [#allocation2], %s795_s25 }
  0x30   : > { %s135_s22 = sshll.u32 %s127_s19, 4  ;;  %p1370_p11 = pnand %p1008_p6, %p35_p8  ;;  %s1374_s22 = int_to_ptr.vmem [resolvable:$true] %s135_s22 }
  0x31   : > { %s1376_s28 = scalar_lea.sflag [#allocation3], %s123_s18  ;;  %s1142_s29 = scalar_lea.hbm %s1368_s27, 4096 }
  0x32   : > { %p1143_p13 = scmp.ne.s32.totalorder %s1368_s27, %s1142_s29  ;;  %p1144_p0 = pneg %p1370_p11 }
  0x33   : > { %s1147_s4 = scalar_lea.hbm %s1542_s0, 8192  ;;  %p1148_p7 = scmp.lt.u32.totalorder %s1368_s27, %s1542_s0 }
  0x34   : > { %p1145_p3 = pnand %p1144_p0, %p1143_p13  ;;  %p1149_p9 = scmp.lt.u32.totalorder %s1147_s4, %s1142_s29 }
  0x35   : > { %p1151_p1 = scmp.lt.u32.totalorder %s1142_s29, %s1368_s27 }
  0x36   : > { %p1146_p5 = pneg %p1145_p3  ;;  %p1150_p2 = por %p1149_p9, %p1148_p7 }
  0x38   : > { %p1152_p4 = por %p1151_p1, %p1150_p2 }
  0x3a   : > { %p1153_p6 = pnand %p1152_p4, %p1146_p5 }
  0x3c   : > { %1156 = shalt.err (!%p1153_p6)
}
  0x3d   : > { %s1157_s7 = scalar_lea.vmem %s1374_s22, 4096  ;;  %s1247_s18 = smov [#allocation2]  }
  0x3e   : > { %p1158_p8 = scmp.ne.s32.totalorder %s1374_s22, %s1157_s7  ;;  %s1162_s24 = sshll.u32 %s1247_s18, 4  ;;  %s1163_s24 = int_to_ptr.vmem [resolvable:$false] %s1162_s24 }
  0x3f   : > { %s1164_s25 = scalar_lea.vmem %s1163_s24, 8192  ;;  %p1165_p3 = scmp.lt.s32.totalorder %s1374_s22, %s1163_s24 }
  0x40   : > { %p1160_p10 = pnand %p1158_p8, %p1144_p0  ;;  %p1166_p7 = scmp.lt.s32.totalorder %s1164_s25, %s1157_s7 }
  0x42   : > { %p1161_p13 = pneg %p1160_p10  ;;  %p1167_p9 = por %p1166_p7, %p1165_p3 }
  0x44   : > { %p1168_p2 = pnand %p1167_p9, %p1161_p13 }
  0x46   : > { %1171 = shalt.err (!%p1168_p2)
}
  0x47   : > { %s1248_s20 = smov 128   ;;  %s1249_s26 = smov 8  }
  0x48   : > { %1002 = dma.hbm_to_vmem [thread:$0]  (!%p1370_p11), %s1368_s27, 4096, %s1374_s22, %s1376_s28, %s1248_s20, %s1248_s20, %s1249_s26  }
  0x49   : > { %p1555_p0 = scmp.ne.s32.totalorder %s1550_s17, 0 }
  0x4a   : > { %s1407_s19 = sand.u32 (!%p1555_p0), 1, %s1234_s10   ;;  %p1556_p5 = scmp.ne.s32.totalorder (!%p1555_p0), %s1548_s15, 0 }
  0x4b   : > { %147 = sbr.rel (%p1555_p0) target bundleno = 407 (0x197), region = 28  ;;  %s800_s29 = sshll.u32 (!%p1555_p0), %s1407_s19, 8 }
  0x4c   : > { %s150_s30 = scalar_lea.sflag (!%p1555_p0), [#allocation3], %s1407_s19  ;;  %s1413_s3 = scalar_lea.vmem (!%p1555_p0), [#allocation2], %s800_s29 }
  0x52   : > { %1217 = dma.done.wait (%p1556_p5), %s150_s30, 4096  }
  0x53   : > { %1219 = vsyncadd (%p1556_p5), %s150_s30, 4294963200  ;;  %p1557_p11 = scmp.eq.s32.totalorder %s1289_s13, 0 }
  0x55   : > { %1221 = dma.done.wait (%p1557_p11), [#allocation6], 2048   ;;  %p1558_p1 = pmov %p1557_p11 }
  0x56   : > { %v1050_v0 = vld [vmem:[#allocation5 + $0x40] sm:$0xff]   ;;  %v1052_v2 = vld [vmem:[#allocation5 + $0x48] sm:$0xff]   ;;  %v1054_v4 = vld [vmem:[#allocation5 + $0x50] sm:$0xff]   ;;  %s1457_s15 = scalar_lea.vmem [#allocation7], %s800_s29  ;;  %s858_s17 = sshll.u32 %s1289_s13, 12 }
  0x57   : > { %1223 = vsyncadd (%p1558_p1), [#allocation6], 4294965248  ;;  %v1051_v1 = vld [vmem:[#allocation5] sm:$0xff]   ;;  %859 = vmatprep.subr.bf16.mxu0 %v1050_v0  ;;  %971 = vmatprep.subr.bf16.mxu1 %v1050_v0  ;;  %v1053_v3 = vld [vmem:[#allocation5 + $0x8] sm:$0xff]   ;;  %s708_s27 = sshll.u32 %s1457_s15, 4  ;;  %s1492_s28 = scalar_lea.hbm %s1544_s2, %s858_s17  ;;  %s1494_s27 = int_to_ptr.vmem [resolvable:$true] %s708_s27 }
  0x58   : > { %860 = vmatpush3.bf16.msra.mxu0 %v1051_v1  ;;  %979 = vmatpush3.bf16.msra.mxu1 %v1051_v1  ;;  %v1055_v5 = vld [vmem:[#allocation5 + $0x10] sm:$0xff]   ;;  %v1056_v6 = vld [vmem:[#allocation5 + $0x58] sm:$0xff]   ;;  %v1058_v8 = vld [vmem:[#allocation5 + $0x60] sm:$0xff]   ;;  %s695_s13 = scalar_lea.sflag [#allocation4], %s1407_s19  ;;  %s1172_s4 = scalar_lea.vmem %s1494_s27, 4096 }
  0x59   : > { %861 = vmatprep.subr.bf16.mxu0 %v1052_v2  ;;  %972 = vmatprep.subr.bf16.mxu1 %v1052_v2  ;;  %v1057_v7 = vld [vmem:[#allocation5 + $0x18] sm:$0xff]   ;;  %v1059_v9 = vld [vmem:[#allocation5 + $0x20] sm:$0xff]   ;;  %v1060_v10 = vld [vmem:[#allocation5 + $0x68] sm:$0xff]   ;;  %p1173_p4 = scmp.ne.s32.totalorder %s1494_s27, %s1172_s4  ;;  %s1250_s5 = smov [#allocation7]  }
  0x5a   : > { %v1068_v11 = vld [vmem:[%s1413_s3 + $0x4] ss:$8 sps:$4 sm:$0xff]   ;;  %v1062_v14 = vld [vmem:[#allocation5 + $0x70] sm:$0xff]   ;;  %v1064_v16 = vld [vmem:[#allocation5 + $0x78] sm:$0xff]   ;;  %s1176_s6 = sshll.u32 %s1250_s5, 4  ;;  %s1177_s6 = int_to_ptr.vmem [resolvable:$false] %s1176_s6 }
  0x5b   : > { %v1071_v12 = vld [vmem:[%s1413_s3 + $0x84] ss:$8 sps:$4 sm:$0xff]   ;;  %533 = vmatprep.mubr.bf16.mxu0 %v1068_v11  ;;  %v1063_v15 = vld [vmem:[#allocation5 + $0x30] sm:$0xff]   ;;  %v1065_v17 = vld [vmem:[#allocation5 + $0x38] sm:$0xff]   ;;  %p1174_p6 = pnand %p1173_p4, %p1359_p12  ;;  %s1178_s7 = scalar_lea.vmem %s1177_s6, 8192 }
  0x5c   : > { %862 = vmatpush3.bf16.msra.mxu0 %v1053_v3  ;;  %980 = vmatpush3.bf16.msra.mxu1 %v1053_v3  ;;  %v1061_v13 = vld [vmem:[#allocation5 + $0x28] sm:$0xff]   ;;  %v1072_v20 = vld [vmem:[%s1413_s3 + $0x14] ss:$8 sps:$4 sm:$0xff]   ;;  %v1076_v22 = vld [vmem:[%s1413_s3 + $0x10] ss:$8 sps:$4 sm:$0xff]   ;;  %p1179_p10 = scmp.lt.s32.totalorder %s1494_s27, %s1177_s6  ;;  %p1180_p13 = scmp.lt.s32.totalorder %s1178_s7, %s1172_s4 }
  0x5d   : > { %863 = vmatprep.subr.bf16.mxu0 %v1054_v4  ;;  %973 = vmatprep.subr.bf16.mxu1 %v1054_v4  ;;  %v1066_v18 = vld [vmem:[%s1413_s3] ss:$8 sps:$4 sm:$0xff]   ;;  %v1074_v21 = vld [vmem:[%s1413_s3 + $0x94] ss:$8 sps:$4 sm:$0xff]   ;;  %v1077_v23 = vld [vmem:[%s1413_s3 + $0x90] ss:$8 sps:$4 sm:$0xff]   ;;  %p1175_p8 = pneg %p1174_p6 }
  0x5e   : > { %597 = vmatprep.mubr.bf16.mxu1 %v1071_v12  ;;  %v1069_v19 = vld [vmem:[%s1413_s3 + $0x80] ss:$8 sps:$4 sm:$0xff]   ;;  %v1078_v24 = vld [vmem:[%s1413_s3 + $0x24] ss:$8 sps:$4 sm:$0xff]   ;;  %v1084_v28 = vld [vmem:[%s1413_s3 + $0x34] ss:$8 sps:$4 sm:$0xff]   ;;  %p1181_p3 = por %p1180_p13, %p1179_p10 }
  0x5f   : > { %v1080_v25 = vld [vmem:[%s1413_s3 + $0xa4] ss:$8 sps:$4 sm:$0xff]   ;;  %v1082_v26 = vld [vmem:[%s1413_s3 + $0x20] ss:$8 sps:$4 sm:$0xff]   ;;  %v1086_v29 = vld [vmem:[%s1413_s3 + $0xb4] ss:$8 sps:$4 sm:$0xff]  }
  0x60   : > { %864 = vmatpush3.bf16.msra.mxu0 %v1055_v5  ;;  %981 = vmatpush3.bf16.msra.mxu1 %v1055_v5  ;;  %v1083_v27 = vld [vmem:[%s1413_s3 + $0xa0] ss:$8 sps:$4 sm:$0xff]   ;;  %v1088_v30 = vld [vmem:[%s1413_s3 + $0x30] ss:$8 sps:$4 sm:$0xff]   ;;  %v1090_v32 = vld [vmem:[%s1413_s3 + $0x44] ss:$8 sps:$4 sm:$0xff]   ;;  %p1182_p7 = pnand %p1181_p3, %p1175_p8 }
  0x61   : > { %865 = vmatprep.subr.bf16.mxu0 %v1056_v6  ;;  %974 = vmatprep.subr.bf16.mxu1 %v1056_v6  ;;  %v1089_v31 = vld [vmem:[%s1413_s3 + $0xb0] ss:$8 sps:$4 sm:$0xff]   ;;  %v1092_v33 = vld [vmem:[%s1413_s3 + $0xc4] ss:$8 sps:$4 sm:$0xff]   ;;  %v1094_v34 = vld [vmem:[%s1413_s3 + $0x40] ss:$8 sps:$4 sm:$0xff]  }
  0x62   : > { %v1095_v35 = vld [vmem:[%s1413_s3 + $0xc0] ss:$8 sps:$4 sm:$0xff]   ;;  %v1096_v36 = vld [vmem:[%s1413_s3 + $0x54] ss:$8 sps:$4 sm:$0xff]   ;;  %v1100_v38 = vld [vmem:[%s1413_s3 + $0x50] ss:$8 sps:$4 sm:$0xff]  }
  0x63   : > { %v1098_v37 = vld [vmem:[%s1413_s3 + $0xd4] ss:$8 sps:$4 sm:$0xff]   ;;  %v1101_v39 = vld [vmem:[%s1413_s3 + $0xd0] ss:$8 sps:$4 sm:$0xff]   ;;  %v1102_v40 = vld [vmem:[%s1413_s3 + $0x64] ss:$8 sps:$4 sm:$0xff]  }
  0x64   : > { %866 = vmatpush3.bf16.msra.mxu0 %v1057_v7  ;;  %982 = vmatpush3.bf16.msra.mxu1 %v1057_v7  ;;  %v1104_v41 = vld [vmem:[%s1413_s3 + $0xe4] ss:$8 sps:$4 sm:$0xff]   ;;  %v1106_v42 = vld [vmem:[%s1413_s3 + $0x60] ss:$8 sps:$4 sm:$0xff]   ;;  %v1108_v44 = vld [vmem:[%s1413_s3 + $0x74] ss:$8 sps:$4 sm:$0xff]  }
  0x65   : > { %867 = vmatprep.subr.bf16.mxu0 %v1058_v8  ;;  %975 = vmatprep.subr.bf16.mxu1 %v1058_v8  ;;  %v1107_v43 = vld [vmem:[%s1413_s3 + $0xe0] ss:$8 sps:$4 sm:$0xff]   ;;  %v1110_v45 = vld [vmem:[%s1413_s3 + $0xf4] ss:$8 sps:$4 sm:$0xff]   ;;  %v1112_v46 = vld [vmem:[%s1413_s3 + $0x70] ss:$8 sps:$4 sm:$0xff]  }
  0x66   : > { %v1113_v47 = vld [vmem:[%s1413_s3 + $0xf0] ss:$8 sps:$4 sm:$0xff]  }
  0x68   : > { %868 = vmatpush3.bf16.msra.mxu0 %v1059_v9  ;;  %983 = vmatpush3.bf16.msra.mxu1 %v1059_v9 }
  0x69   : > { %869 = vmatprep.subr.bf16.mxu0 %v1060_v10  ;;  %976 = vmatprep.subr.bf16.mxu1 %v1060_v10 }
  0x6c   : > { %870 = vmatpush3.bf16.msra.mxu0 %v1061_v13  ;;  %984 = vmatpush3.bf16.msra.mxu1 %v1061_v13 }
  0x6d   : > { %871 = vmatprep.subr.bf16.mxu0 %v1062_v14  ;;  %977 = vmatprep.subr.bf16.mxu1 %v1062_v14 }
  0x70   : > { %872 = vmatpush3.bf16.msra.mxu0 %v1063_v15  ;;  %985 = vmatpush3.bf16.msra.mxu1 %v1063_v15 }
  0x71   : > { %873 = vmatprep.subr.bf16.mxu0 %v1064_v16  ;;  %978 = vmatprep.subr.bf16.mxu1 %v1064_v16 }
  0x74   : > { %874 = vmatpush3.bf16.msra.mxu0 %v1065_v17  ;;  %986 = vmatpush3.bf16.msra.mxu1 %v1065_v17 }
  0x77   : > { %534 = vmatmul.mubr.bf16.vlgmr.msra.gmra.mrb[0].mxu0 %v1066_v18  ;;  %598 = vmatmul.mubr.bf16.vlgmr.msra.gmra.mrb[0].mxu1 %v1069_v19 }
  0x78   : > { %541 = vmatprep.mubr.bf16.mxu0 %v1072_v20  ;;  %605 = vmatprep.mubr.bf16.mxu1 %v1074_v21 }
  0x7f   : > { %542 = vmatmul.mubr.bf16.gmra.mrb[4].mxu0 %v1076_v22  ;;  %606 = vmatmul.mubr.bf16.gmra.mrb[4].mxu1 %v1077_v23 }
  0x80   : > { %549 = vmatprep.mubr.bf16.mxu0 %v1078_v24  ;;  %613 = vmatprep.mubr.bf16.mxu1 %v1080_v25 }
  0x87   : > { %550 = vmatmul.mubr.bf16.gmra.mrb[8].mxu0 %v1082_v26  ;;  %614 = vmatmul.mubr.bf16.gmra.mrb[8].mxu1 %v1083_v27 }
  0x88   : > { %557 = vmatprep.mubr.bf16.mxu0 %v1084_v28  ;;  %621 = vmatprep.mubr.bf16.mxu1 %v1086_v29 }
  0x8f   : > { %558 = vmatmul.mubr.bf16.gmra.mrb[12].mxu0 %v1088_v30  ;;  %622 = vmatmul.mubr.bf16.gmra.mrb[12].mxu1 %v1089_v31 }
  0x90   : > { %565 = vmatprep.mubr.bf16.mxu0 %v1090_v32  ;;  %629 = vmatprep.mubr.bf16.mxu1 %v1092_v33 }
  0x97   : > { %566 = vmatmul.mubr.bf16.gmra.mrb[16].mxu0 %v1094_v34  ;;  %630 = vmatmul.mubr.bf16.gmra.mrb[16].mxu1 %v1095_v35 }
  0x98   : > { %573 = vmatprep.mubr.bf16.mxu0 %v1096_v36  ;;  %637 = vmatprep.mubr.bf16.mxu1 %v1098_v37 }
  0x9f   : > { %574 = vmatmul.mubr.bf16.gmra.mrb[20].mxu0 %v1100_v38  ;;  %638 = vmatmul.mubr.bf16.gmra.mrb[20].mxu1 %v1101_v39 }
  0xa0   : > { %581 = vmatprep.mubr.bf16.mxu0 %v1102_v40  ;;  %645 = vmatprep.mubr.bf16.mxu1 %v1104_v41 }
  0xa7   : > { %582 = vmatmul.mubr.bf16.gmra.mrb[24].mxu0 %v1106_v42  ;;  %646 = vmatmul.mubr.bf16.gmra.mrb[24].mxu1 %v1107_v43 }
  0xa8   : > { %589 = vmatprep.mubr.bf16.mxu0 %v1108_v44  ;;  %653 = vmatprep.mubr.bf16.mxu1 %v1110_v45 }
  0xaf   : > { %590 = vmatmul.mubr.bf16.gmra.mrb[28].mxu0 %v1112_v46  ;;  %654 = vmatmul.mubr.bf16.gmra.mrb[28].mxu1 %v1113_v47 }
 0x14a   : > { %v875_v48 = vpop.f32.mrb[0].mxu0  ;;  %v923_v49 = vpop.f32.mrb[0].mxu1 }
 0x14b   : > { %v876_v50 = vpop.f32.mrb[1].mxu0  ;;  %v924_v51 = vpop.f32.mrb[1].mxu1 }
 0x14c   : > { %v877_v52 = vadd.f32 %v876_v50, %v875_v48  ;;  %v925_v53 = vadd.f32 %v924_v51, %v923_v49  ;;  %v878_v54 = vpop.f32.mrb[2].mxu0  ;;  %v926_v55 = vpop.f32.mrb[2].mxu1 }
 0x14d   : > { %v879_v56 = vpop.f32.mrb[3].mxu0  ;;  %v927_v57 = vpop.f32.mrb[3].mxu1 }
 0x14e   : > { %662 = vst [vmem:[%s1457_s15] sm:$0xff] %v877_v52  ;;  %678 = vst [vmem:[%s1457_s15 + $0x80] sm:$0xff] %v925_v53  ;;  %v880_v58 = vadd.f32 %v879_v56, %v878_v54  ;;  %v928_v59 = vadd.f32 %v927_v57, %v926_v55 }
 0x150   : > { %663 = vst [vmem:[%s1457_s15 + $0x8] sm:$0xff] %v880_v58  ;;  %679 = vst [vmem:[%s1457_s15 + $0x88] sm:$0xff] %v928_v59 }
 0x152   : > { %v881_v60 = vpop.f32.mrb[4].mxu0  ;;  %v929_v61 = vpop.f32.mrb[4].mxu1 }
 0x153   : > { %v882_v62 = vpop.f32.mrb[5].mxu0  ;;  %v930_v63 = vpop.f32.mrb[5].mxu1 }
 0x154   : > { %v883_v0 = vadd.f32 %v882_v62, %v881_v60  ;;  %v931_v1 = vadd.f32 %v930_v63, %v929_v61  ;;  %v884_v2 = vpop.f32.mrb[6].mxu0  ;;  %v932_v3 = vpop.f32.mrb[6].mxu1 }
 0x155   : > { %v885_v4 = vpop.f32.mrb[7].mxu0  ;;  %v933_v5 = vpop.f32.mrb[7].mxu1 }
 0x156   : > { %664 = vst [vmem:[%s1457_s15 + $0x10] sm:$0xff] %v883_v0  ;;  %680 = vst [vmem:[%s1457_s15 + $0x90] sm:$0xff] %v931_v1  ;;  %v886_v6 = vadd.f32 %v885_v4, %v884_v2  ;;  %v934_v7 = vadd.f32 %v933_v5, %v932_v3 }
 0x158   : > { %665 = vst [vmem:[%s1457_s15 + $0x18] sm:$0xff] %v886_v6  ;;  %681 = vst [vmem:[%s1457_s15 + $0x98] sm:$0xff] %v934_v7 }
 0x15a   : > { %v887_v8 = vpop.f32.mrb[8].mxu0  ;;  %v935_v9 = vpop.f32.mrb[8].mxu1 }
 0x15b   : > { %v888_v10 = vpop.f32.mrb[9].mxu0  ;;  %v936_v11 = vpop.f32.mrb[9].mxu1 }
 0x15c   : > { %v889_v12 = vadd.f32 %v888_v10, %v887_v8  ;;  %v937_v13 = vadd.f32 %v936_v11, %v935_v9  ;;  %v890_v14 = vpop.f32.mrb[10].mxu0  ;;  %v938_v15 = vpop.f32.mrb[10].mxu1 }
 0x15d   : > { %v891_v16 = vpop.f32.mrb[11].mxu0  ;;  %v939_v17 = vpop.f32.mrb[11].mxu1 }
 0x15e   : > { %666 = vst [vmem:[%s1457_s15 + $0x20] sm:$0xff] %v889_v12  ;;  %682 = vst [vmem:[%s1457_s15 + $0xa0] sm:$0xff] %v937_v13  ;;  %v892_v18 = vadd.f32 %v891_v16, %v890_v14  ;;  %v940_v19 = vadd.f32 %v939_v17, %v938_v15 }
 0x160   : > { %667 = vst [vmem:[%s1457_s15 + $0x28] sm:$0xff] %v892_v18  ;;  %683 = vst [vmem:[%s1457_s15 + $0xa8] sm:$0xff] %v940_v19 }
 0x162   : > { %v893_v20 = vpop.f32.mrb[12].mxu0  ;;  %v941_v21 = vpop.f32.mrb[12].mxu1 }
 0x163   : > { %v894_v22 = vpop.f32.mrb[13].mxu0  ;;  %v942_v23 = vpop.f32.mrb[13].mxu1 }
 0x164   : > { %v895_v24 = vadd.f32 %v894_v22, %v893_v20  ;;  %v943_v25 = vadd.f32 %v942_v23, %v941_v21  ;;  %v896_v26 = vpop.f32.mrb[14].mxu0  ;;  %v944_v27 = vpop.f32.mrb[14].mxu1 }
 0x165   : > { %v897_v28 = vpop.f32.mrb[15].mxu0  ;;  %v945_v29 = vpop.f32.mrb[15].mxu1 }
 0x166   : > { %668 = vst [vmem:[%s1457_s15 + $0x30] sm:$0xff] %v895_v24  ;;  %684 = vst [vmem:[%s1457_s15 + $0xb0] sm:$0xff] %v943_v25  ;;  %v898_v30 = vadd.f32 %v897_v28, %v896_v26  ;;  %v946_v31 = vadd.f32 %v945_v29, %v944_v27 }
 0x168   : > { %669 = vst [vmem:[%s1457_s15 + $0x38] sm:$0xff] %v898_v30  ;;  %685 = vst [vmem:[%s1457_s15 + $0xb8] sm:$0xff] %v946_v31 }
 0x16a   : > { %v899_v32 = vpop.f32.mrb[16].mxu0  ;;  %v947_v33 = vpop.f32.mrb[16].mxu1 }
 0x16b   : > { %v900_v34 = vpop.f32.mrb[17].mxu0  ;;  %v948_v35 = vpop.f32.mrb[17].mxu1 }
 0x16c   : > { %v901_v36 = vadd.f32 %v900_v34, %v899_v32  ;;  %v949_v37 = vadd.f32 %v948_v35, %v947_v33  ;;  %v902_v38 = vpop.f32.mrb[18].mxu0  ;;  %v950_v39 = vpop.f32.mrb[18].mxu1 }
 0x16d   : > { %v903_v40 = vpop.f32.mrb[19].mxu0  ;;  %v951_v41 = vpop.f32.mrb[19].mxu1 }
 0x16e   : > { %670 = vst [vmem:[%s1457_s15 + $0x40] sm:$0xff] %v901_v36  ;;  %686 = vst [vmem:[%s1457_s15 + $0xc0] sm:$0xff] %v949_v37  ;;  %v904_v42 = vadd.f32 %v903_v40, %v902_v38  ;;  %v952_v43 = vadd.f32 %v951_v41, %v950_v39 }
 0x170   : > { %671 = vst [vmem:[%s1457_s15 + $0x48] sm:$0xff] %v904_v42  ;;  %687 = vst [vmem:[%s1457_s15 + $0xc8] sm:$0xff] %v952_v43 }
 0x172   : > { %v905_v44 = vpop.f32.mrb[20].mxu0  ;;  %v953_v45 = vpop.f32.mrb[20].mxu1 }
 0x173   : > { %v906_v46 = vpop.f32.mrb[21].mxu0  ;;  %v954_v47 = vpop.f32.mrb[21].mxu1 }
 0x174   : > { %v907_v48 = vadd.f32 %v906_v46, %v905_v44  ;;  %v955_v49 = vadd.f32 %v954_v47, %v953_v45  ;;  %v908_v50 = vpop.f32.mrb[22].mxu0  ;;  %v956_v51 = vpop.f32.mrb[22].mxu1 }
 0x175   : > { %v909_v52 = vpop.f32.mrb[23].mxu0  ;;  %v957_v53 = vpop.f32.mrb[23].mxu1 }
 0x176   : > { %672 = vst [vmem:[%s1457_s15 + $0x50] sm:$0xff] %v907_v48  ;;  %688 = vst [vmem:[%s1457_s15 + $0xd0] sm:$0xff] %v955_v49  ;;  %v910_v54 = vadd.f32 %v909_v52, %v908_v50  ;;  %v958_v55 = vadd.f32 %v957_v53, %v956_v51 }
 0x178   : > { %673 = vst [vmem:[%s1457_s15 + $0x58] sm:$0xff] %v910_v54  ;;  %689 = vst [vmem:[%s1457_s15 + $0xd8] sm:$0xff] %v958_v55 }
 0x17a   : > { %v911_v56 = vpop.f32.mrb[24].mxu0  ;;  %v959_v57 = vpop.f32.mrb[24].mxu1 }
 0x17b   : > { %v912_v58 = vpop.f32.mrb[25].mxu0  ;;  %v960_v59 = vpop.f32.mrb[25].mxu1 }
 0x17c   : > { %v913_v60 = vadd.f32 %v912_v58, %v911_v56  ;;  %v961_v61 = vadd.f32 %v960_v59, %v959_v57  ;;  %v914_v62 = vpop.f32.mrb[26].mxu0  ;;  %v962_v63 = vpop.f32.mrb[26].mxu1 }
 0x17d   : > { %v915_v0 = vpop.f32.mrb[27].mxu0  ;;  %v963_v1 = vpop.f32.mrb[27].mxu1 }
 0x17e   : > { %674 = vst [vmem:[%s1457_s15 + $0x60] sm:$0xff] %v913_v60  ;;  %690 = vst [vmem:[%s1457_s15 + $0xe0] sm:$0xff] %v961_v61  ;;  %v916_v2 = vadd.f32 %v915_v0, %v914_v62  ;;  %v964_v3 = vadd.f32 %v963_v1, %v962_v63 }
 0x180   : > { %675 = vst [vmem:[%s1457_s15 + $0x68] sm:$0xff] %v916_v2  ;;  %691 = vst [vmem:[%s1457_s15 + $0xe8] sm:$0xff] %v964_v3 }
 0x182   : > { %v917_v4 = vpop.f32.mrb[28].mxu0  ;;  %v965_v5 = vpop.f32.mrb[28].mxu1 }
 0x183   : > { %v918_v6 = vpop.f32.mrb[29].mxu0  ;;  %v966_v7 = vpop.f32.mrb[29].mxu1 }
 0x184   : > { %v919_v8 = vadd.f32 %v918_v6, %v917_v4  ;;  %v967_v9 = vadd.f32 %v966_v7, %v965_v5  ;;  %v920_v10 = vpop.f32.mrb[30].mxu0  ;;  %v968_v11 = vpop.f32.mrb[30].mxu1 }
 0x185   : > { %v921_v12 = vpop.f32.mrb[31].mxu0  ;;  %v969_v13 = vpop.f32.mrb[31].mxu1 }
 0x186   : > { %676 = vst [vmem:[%s1457_s15 + $0x70] sm:$0xff] %v919_v8  ;;  %692 = vst [vmem:[%s1457_s15 + $0xf0] sm:$0xff] %v967_v9  ;;  %v922_v14 = vadd.f32 %v921_v12, %v920_v10  ;;  %v970_v15 = vadd.f32 %v969_v13, %v968_v11 }
 0x188   : > { %677 = vst [vmem:[%s1457_s15 + $0x78] sm:$0xff] %v922_v14  ;;  %693 = vst [vmem:[%s1457_s15 + $0xf8] sm:$0xff] %v970_v15 }
 0x189   : > { %1185 = shalt.err (!%p1182_p7)
}
 0x18a   : > { %s1186_s18 = scalar_lea.hbm %s1492_s28, 4096  ;;  %s1190_s20 = scalar_lea.hbm %s1544_s2, 8192 }
 0x18b   : > { %p1187_p9 = scmp.ne.s32.totalorder %s1492_s28, %s1186_s18  ;;  %p1191_p5 = scmp.lt.u32.totalorder %s1492_s28, %s1544_s2 }
 0x18c   : > { %p1192_p11 = scmp.lt.u32.totalorder %s1190_s20, %s1186_s18  ;;  %p1194_p4 = scmp.lt.u32.totalorder %s1186_s18, %s1492_s28 }
 0x18d   : > { %p1188_p2 = pnand %p1187_p9, %p1359_p12 }
 0x18e   : > { %p1193_p1 = por %p1192_p11, %p1191_p5 }
 0x18f   : > { %p1189_p0 = pneg %p1188_p2 }
 0x190   : > { %p1195_p6 = por %p1194_p4, %p1193_p1 }
 0x192   : > { %p1196_p8 = pnand %p1195_p6, %p1189_p0 }
 0x194   : > { %1199 = shalt.err (!%p1196_p8)
}
 0x195   : > { %s1251_s30 = smov 128   ;;  %s1252_s3 = smov 8  }
 0x196   : > { %993 = dma.vmem_to_hbm [thread:$0]  (%p1359_p12), %s1494_s27, 4096, %s1492_s28, %s695_s13, %s1251_s30, %s1251_s30, %s1252_s3  }
 0x197 PF: > { %s723_s15 = sand.u32 1, %s1230_s9   ;;  %p1559_p10 = scmp.ne.s32.totalorder %s1549_s16, 0 }
 0x198   : > { %p1560_p13 = scmp.ge.s32.totalorder %s1242_s12, 2  ;;  %s724_s17 = scalar_lea.sflag [#allocation4], %s723_s15 }
 0x19a   : > { %p1004_p3 = pnand %p1560_p13, %p1559_p10 }
 0x19c   : > { %1225 = dma.done.wait (!%p1004_p3), %s724_s17, 4096  }
 0x19d   : > { %1227 = vsyncadd (!%p1004_p3), %s724_s17, 4294963200  ;;  %p16_p7 = scmp.ge.s32.totalorder %s1324_s21, 4   ;;  %s1561_s9 = smov %s1234_s10 }
 0x19e   : > { %s1562_s10 = smov %s1238_s11  ;;  %s1563_s11 = smov %s1355_s8 }
 0x19f   : > { %s1564_s12 = smov %s1324_s21  ;;  %18 = sbr.rel (!%p16_p7) target bundleno = 6 (0x6), region = 77 }
 0x1a6   :  { %729 = vsyncpa [#allocation3], 1 }
 0x1a7   :  { %731 = vsyncpa [#allocation3 + $0x1], 1 }
 0x1a8   :  { %732 = vsyncpa [#allocation6], 1 }
 0x1a9   :  { %733 = vsyncpa [#allocation4], 1 }
 0x1aa   :  { %735 = vsyncpa [#allocation4 + $0x1], 1 }

</bundles_post_ra>
